<compile_context>
chip_gen: v7x
topology: tpu7x:2x2x1
jax: 0.10.0
libtpu: 0.0.40
codegen_flags: <defaults>
</compile_context>

<pallas_src>
import functools

import jax
import jax.numpy as jnp
from jax.experimental import pallas as pl
from jax.experimental.pallas import tpu as pltpu


# ---------------------------------------------------------------------------
# Helpers
# ---------------------------------------------------------------------------
@functools.lru_cache(maxsize=1)
def _vmem_limit_bytes():
    """Scoped-VMEM cap: ~80 MiB on 128-MiB parts (v5e/v6e), ~40 MiB on v7x (64 MiB/TC)."""
    cap = 64 * 1024 * 1024
    try:
        cap = int(getattr(pltpu.get_tpu_info(), "vmem_capacity_bytes", cap))
    except Exception:
        pass
    return int(min(96 * 1024 * 1024, cap * 5 // 8))


def _pick_row_tile(rows, target=1024):
    """Largest row tile <= target that divides `rows` (multiple of 8 when tiling)."""
    if rows <= target:
        return rows
    for t in range(target, 7, -1):
        if rows % t == 0 and t % 8 == 0:
            return t
    # TODO(synk): for awkward resolutions with no multiple-of-8 divisor <= target,
    # fall back to a padded-rows variant instead of a whole-image tile.
    return rows


# ---------------------------------------------------------------------------
# Kernel 1: 1x1 conv (matmul) + folded-BN bias + ReLU + channel/spatial gates
# ---------------------------------------------------------------------------
def _conv1_kernel(x_ref, w_ref, b_ref, mc_ref, ms_ref, o_ref):
    # x: (TR, Cin) bf16, w: (Cin, P) bf16 (BN scale folded in),
    # b/mc: (1, P) f32, ms: (TR, 1) f32, o: (TR, P) bf16
    y = jnp.dot(x_ref[...], w_ref[...], preferred_element_type=jnp.float32)
    y = jnp.maximum(y + b_ref[...], 0.0)
    y = y * mc_ref[...] * ms_ref[...]
    o_ref[...] = y.astype(o_ref.dtype)


def fused_conv1_bn_relu_mask(x, w1, b1, mc1, ms):
    """x:(N,R,Cin) bf16, w1:(Cin,P) bf16, b1:(1,P) f32, mc1:(N,1,P), ms:(N,R,1) -> (N,R,P) bf16."""
    N, R, K = x.shape
    P = w1.shape[1]
    TR = _pick_row_tile(R, target=1024)
    # TODO(synk): for P < 128 stages, pack two spatial rows per output row (N, R/2, 2P)
    # so stores are lane-dense; also fuse the GAP for mask_c2 as a second (N,1,P) output.
    return pl.pallas_call(
        _conv1_kernel,
        out_shape=jax.ShapeDtypeStruct((N, R, P), jnp.bfloat16),
        grid=(N, R // TR),
        in_specs=[
            pl.BlockSpec((None, TR, K), lambda n, r: (n, r, 0)),
            pl.BlockSpec((K, P), lambda n, r: (0, 0)),
            pl.BlockSpec((1, P), lambda n, r: (0, 0)),
            pl.BlockSpec((None, 1, P), lambda n, r: (n, 0, 0)),
            pl.BlockSpec((None, TR, 1), lambda n, r: (n, r, 0)),
        ],
        out_specs=pl.BlockSpec((None, TR, P), lambda n, r: (n, r, 0)),
        compiler_params=pltpu.CompilerParams(
            dimension_semantics=("parallel", "parallel"),
            vmem_limit_bytes=_vmem_limit_bytes(),
        ),
    )(x, w1, b1, mc1, ms)


# ---------------------------------------------------------------------------
# Kernel 2: fused 3x3 conv + bn2 + relu + gates + 1x1 conv + bn3 + gate +
#           residual + relu  (row-tiled; no im2col; conv2 output never hits HBM)
# ---------------------------------------------------------------------------
def _make_conv23_kernel(W, R, TR, P, F):
    def kernel(out1_ref, w2_ref, b2_ref, mc2_ref, ms_ref, w3_ref, b3_ref, id_ref,
               o_ref, pad_ref):
        r = pl.program_id(1)

        # Fill the zero-padded flat activation once per image (scratch persists across
        # the "arbitrary" row-tile axis).  pad[F : F+R] = out1, F zero rows each side.
        @pl.when(r == 0)
        def _():
            pad_ref[0:F, :] = jnp.zeros((F, P), jnp.bfloat16)
            pad_ref[F + R:, :] = jnp.zeros((F, P), jnp.bfloat16)
            pad_ref[F:F + R, :] = out1_ref[...]

        row0 = pl.multiple_of(r * TR, 8)
        # 8-aligned dynamic window covering every 3x3 tap of this row tile; the 9
        # per-tap views below are cheap static slices of this value.
        win = pad_ref[pl.ds(row0, TR + 2 * F), :]

        # Flattened-row index -> image column (for x-boundary masks).
        col = (row0 + jax.lax.broadcasted_iota(jnp.int32, (TR, 1), 0)) % W

        # 3x3 conv as 9 shifted matmuls: shift d = (ky-1)*W + (kx-1) in flattened space.
        # Zero halos absorb y-out-of-bounds taps; column masks kill x-out-of-bounds
        # (row-wrap) taps.  Masks depend only on kx, so group the ky sums per kx.
        # TODO(synk): group the 3 ky taps per kx into one K=3P matmul for better MXU
        # contraction utilization on v6e/v7x once this stage is no longer HBM-bound.
        acc = jnp.zeros((TR, P), jnp.float32)
        for kx in range(3):
            part = jnp.zeros((TR, P), jnp.float32)
            for ky in range(3):
                s = F + (ky - 1) * W + (kx - 1)
                a = win[s:s + TR, :]
                part = part + jnp.dot(a, w2_ref[ky * 3 + kx],
                                      preferred_element_type=jnp.float32)
            if kx == 0:
                part = part * (col != 0).astype(jnp.float32)
            elif kx == 2:
                part = part * (col != W - 1).astype(jnp.float32)
            acc = acc + part

        # bn2 (bias only; scale folded into w2) + relu + channel/spatial gates
        y2 = jnp.maximum(acc + b2_ref[...], 0.0)
        y2 = y2 * mc2_ref[...] * ms_ref[...]

        # conv3 (1x1) + bn3 bias + spatial gate + residual (f32 add) + relu, bf16 store
        y3 = jnp.dot(y2.astype(jnp.bfloat16), w3_ref[...],
                     preferred_element_type=jnp.float32)
        y3 = (y3 + b3_ref[...]) * ms_ref[...] + id_ref[...].astype(jnp.float32)
        o_ref[...] = jnp.maximum(y3, 0.0).astype(o_ref.dtype)

    return kernel


def fused_conv2_conv3_residual(out1, w2, b2, mc2, ms, w3, b3, identity, *, H, W,
                               row_tile=None):
    """out1:(N,R,P) bf16, w2:(9,P,P) bf16, b2:(1,P), mc2:(N,1,P), ms:(N,R,1),
    w3:(P,C3) bf16, b3:(1,C3), identity:(N,R,C3) bf16 -> (N,R,C3) bf16."""
    N, R, P = out1.shape
    C3 = w3.shape[1]
    F = ((W + 1 + 7) // 8) * 8          # halo rows (>= W+1, multiple of 8)
    TR = row_tile if row_tile is not None else _pick_row_tile(R, target=1024)
    assert R % TR == 0 and (TR % 8 == 0 or TR == R)
    RT = R // TR
    kernel = _make_conv23_kernel(W, R, TR, P, F)
    # TODO(synk): exploit channel-gate sparsity via PrefetchScalarGridSpec (shrink the
    # conv2/conv3 contraction to active channels) to realize the advertised FLOP savings.
    return pl.pallas_call(
        kernel,
        out_shape=jax.ShapeDtypeStruct((N, R, C3), jnp.bfloat16),
        grid=(N, RT),
        in_specs=[
            # out1: whole image, resident across the row-tile axis (re-DMA'd per image).
            # TODO(synk): single-buffer this spec once pl.Buffered(1) is load-bearing.
            pl.BlockSpec((None, R, P), lambda n, r: (n, 0, 0)),
            pl.BlockSpec((9, P, P), lambda n, r: (0, 0, 0)),
            pl.BlockSpec((1, P), lambda n, r: (0, 0)),
            pl.BlockSpec((None, 1, P), lambda n, r: (n, 0, 0)),
            pl.BlockSpec((None, TR, 1), lambda n, r: (n, r, 0)),
            pl.BlockSpec((P, C3), lambda n, r: (0, 0)),
            pl.BlockSpec((1, C3), lambda n, r: (0, 0)),
            pl.BlockSpec((None, TR, C3), lambda n, r: (n, r, 0)),
        ],
        out_specs=pl.BlockSpec((None, TR, C3), lambda n, r: (n, r, 0)),
        scratch_shapes=[pltpu.VMEM((R + 2 * F, P), jnp.bfloat16)],
        compiler_params=pltpu.CompilerParams(
            # Row-tile axis must be "arbitrary": the padded scratch is filled at r==0
            # and reused by the following tiles of the same image.
            dimension_semantics=("parallel", "arbitrary"),
            vmem_limit_bytes=_vmem_limit_bytes(),
        ),
    )(out1, w2, b2, mc2, ms, w3, b3, identity)


# ---------------------------------------------------------------------------
# Glue: gating heads, BN folding
# ---------------------------------------------------------------------------
# TODO(synk): Mask_s / Mask_c are external Gumbel-softmax gating modules in DGNet; modeled
# here as deterministic eval-time gates (pool -> linear -> hard threshold) with the same
# output contract (binary masks + per-sample norms).
def mask_s_fn(x_nhwc, w_s, b_s, eta):
    N, H, W, C = x_nhwc.shape
    pooled = x_nhwc.reshape(N, H // eta, eta, W // eta, eta, C).mean(
        axis=(2, 4), dtype=jnp.float32)
    logits = pooled @ w_s + b_s
    return (logits >= 0.0).astype(jnp.float32)          # (N, H//eta, W//eta, 1)


def mask_c_fn(gap, w_c, b_c):
    logits = gap @ w_c + b_c
    return (logits >= 0.0).astype(jnp.float32)           # (N, Cout)


def fold_bn(gamma, beta, mean, var, eps=1e-5):
    scale = gamma / jnp.sqrt(var + eps)
    bias = beta - mean * scale
    return scale[None, :], bias[None, :]


# ---------------------------------------------------------------------------
# Bottleneck forward (eval-mode semantics)
# ---------------------------------------------------------------------------
def bottleneck_forward(x_nchw, p, norm_1, norm_2, flops, *, eta=8,
                       return_aux=False, row_tile2=None):
    expansion = 4
    # Single activation materialization: NCHW f32 -> NHWC bf16; reused as conv1 input,
    # residual, and (with f32 accumulation) for the gating heads.
    # TODO(synk): in a full backbone keep the whole block chain in this NHWC/bf16 layout
    # and transpose only at the network boundary.
    x_nhwc = jnp.transpose(x_nchw, (0, 2, 3, 1)).astype(jnp.bfloat16)
    N, H, W, Cin = x_nhwc.shape
    P = p["w1"].shape[1]                                            # planes
    C3 = p["w3"].shape[1]                                           # planes * expansion
    R = H * W
    assert Cin == C3, "downsample=None requires inplanes == planes * expansion"

    # --- gating masks (glue) ---
    mask_s_m = mask_s_fn(x_nhwc, p["ws"], p["bs"], eta)             # coarse (N, h, w, 1)
    norm_s = mask_s_m.sum(axis=(1, 2, 3))
    h, w_ = mask_s_m.shape[1], mask_s_m.shape[2]
    # stride == 1  =>  mask_s1 == mask_s2: upsample once, reuse
    mask_s_img = jnp.repeat(jnp.repeat(mask_s_m, H // h, axis=1), W // w_, axis=2)
    mask_s_flat = mask_s_img.reshape(N, R, 1)

    gap_x = x_nhwc.mean(axis=(1, 2), dtype=jnp.float32)             # (N, Cin) f32 accum
    mask_c1 = mask_c_fn(gap_x, p["wc1"], p["bc1"])                  # (N, P)
    norm_c1 = mask_c1.sum(axis=1)

    x_flat = x_nhwc.reshape(N, R, Cin)                              # bf16; also residual

    # --- conv1 (1x1) + bn1 + relu + mask_c1 * mask_s   [Pallas, bf16 MXU] ---
    out1 = fused_conv1_bn_relu_mask(
        x_flat, p["w1"], p["bias1"], mask_c1.reshape(N, 1, P), mask_s_flat)  # (N,R,P) bf16

    # GAP directly on bf16 out1 with f32 accumulation (no f32 copy of out1 in HBM)
    gap1 = out1.mean(axis=1, dtype=jnp.float32)                     # (N, P)
    mask_c2 = mask_c_fn(gap1, p["wc2"], p["bc2"])                   # (N, P)
    norm_c2 = mask_c2.sum(axis=1)

    # --- conv2 (3x3) + bn2 + relu + gates, fused with conv3 (1x1) + bn3 + gate +
    #     residual + relu   [single row-tiled Pallas kernel; bf16 in/out] ---
    out = fused_conv2_conv3_residual(
        out1, p["w2"], p["bias2"], mask_c2.reshape(N, 1, P), mask_s_flat,
        p["w3"], p["bias3"], x_flat, H=H, W=W, row_tile=row_tile2)  # (N, R, C3) bf16
    out_nchw = jnp.transpose(out.reshape(N, H, W, C3), (0, 3, 1, 2))

    # --- bookkeeping (torch.cat semantics; shapes grow per block -> keep outside jit) ---
    numel_s = float(h * w_ * 1)
    planes_t = jnp.array([float(P)], jnp.float32)
    norm_1 = jnp.concatenate(
        [norm_1, jnp.concatenate([norm_s, jnp.array([numel_s], jnp.float32)])[None]], axis=0)
    norm_2 = jnp.concatenate([norm_2, jnp.concatenate([norm_c1, planes_t])[None]], axis=0)
    norm_2 = jnp.concatenate([norm_2, jnp.concatenate([norm_c2, planes_t])[None]], axis=0)

    s_sum = mask_s_img.sum(axis=(1, 2, 3))          # == s_sum_1 for stride 1
    flops_conv1 = s_sum * norm_c1 * Cin
    flops_conv2 = 9.0 * s_sum * norm_c2 * norm_c1
    flops_conv3 = s_sum * P * expansion * norm_c2
    flops_blk = flops_conv1 + flops_conv2 + flops_conv3
    flops_full = jnp.array(
        [H * W * P * Cin + 9 * H * W * P * P + H * W * P * P * expansion], jnp.float32)
    flops = jnp.concatenate([flops, jnp.concatenate([flops_blk, flops_full])[None]], axis=0)

    if return_aux:
        aux = dict(out1=out1, mask_c1=mask_c1, mask_c2=mask_c2, mask_s=mask_s_flat)
        return out_nchw, norm_1, norm_2, flops, aux
    return out_nchw, norm_1, norm_2, flops


# ---------------------------------------------------------------------------
# Plain-JAX reference (f32 / lax.conv) for the two fused kernels
# ---------------------------------------------------------------------------
def reference_outputs(x_nchw, p, aux):
    x = jnp.transpose(x_nchw, (0, 2, 3, 1)).astype(jnp.float32)
    N, H, W, Cin = x.shape
    P = p["w1"].shape[1]
    C3 = p["w3"].shape[1]
    xb = x.astype(jnp.bfloat16).astype(jnp.float32)                 # kernels consume bf16 acts
    w1 = p["w1"].astype(jnp.float32)
    w2 = p["w2"].astype(jnp.float32).reshape(3, 3, P, P)            # k = ky*3 + kx -> (ky, kx)
    w3 = p["w3"].astype(jnp.float32)
    ms = aux["mask_s"].reshape(N, H, W, 1)
    mc1 = aux["mask_c1"][:, None, None, :]
    mc2 = aux["mask_c2"][:, None, None, :]

    ref1 = jnp.einsum("nhwc,cp->nhwp", xb, w1) + p["bias1"].reshape(1, 1, 1, P)
    ref1 = jnp.maximum(ref1, 0.0) * mc1 * ms

    out1_k = aux["out1"].astype(jnp.float32).reshape(N, H, W, P)
    y2 = jax.lax.conv_general_dilated(
        out1_k, w2, window_strides=(1, 1), padding=((1, 1), (1, 1)),
        dimension_numbers=("NHWC", "HWIO", "NHWC"))
    y2 = jnp.maximum(y2 + p["bias2"].reshape(1, 1, 1, P), 0.0) * mc2 * ms
    y3 = jnp.einsum("nhwp,pc->nhwc", y2, w3) + p["bias3"].reshape(1, 1, 1, C3)
    y3 = jnp.maximum(y3 * ms + xb, 0.0)
    return ref1, jnp.transpose(y3, (0, 3, 1, 2))


# ---------------------------------------------------------------------------
# Deterministic parameter setup (BN scale pre-folded into weights, weights in bf16)
# ---------------------------------------------------------------------------
def make_params(key, inplanes, planes):
    expansion = 4
    ks = jax.random.split(key, 12)
    p = {}
    w1 = 0.1 * jax.random.normal(ks[0], (inplanes, planes), jnp.float32)          # (Cin, P)
    w2 = 0.1 * jax.random.normal(ks[1], (9, planes, planes), jnp.float32)         # (k, Cin, Cout)
    w3 = 0.1 * jax.random.normal(ks[2], (planes, planes * expansion), jnp.float32)
    scales = {}
    for i, c in zip((1, 2, 3), (planes, planes, planes * expansion)):
        gamma = 1.0 + 0.1 * jax.random.normal(ks[2 + i], (c,), jnp.float32)
        beta = 0.1 * jax.random.normal(ks[5 + i], (c,), jnp.float32)
        scale, bias = fold_bn(gamma, beta, jnp.zeros((c,)), jnp.ones((c,)))        # eval stats
        scales[i] = scale
        p[f"bias{i}"] = bias                                                       # (1, c) f32
    # fold BN scale into the conv-weight output columns, store bf16 for the MXU
    p["w1"] = (w1 * scales[1]).astype(jnp.bfloat16)
    p["w2"] = (w2 * scales[2].reshape(1, 1, planes)).astype(jnp.bfloat16)
    p["w3"] = (w3 * scales[3]).astype(jnp.bfloat16)
    # gating heads (plain-JAX glue)
    p["ws"] = jax.random.normal(ks[9], (inplanes, 1), jnp.float32)
    p["bs"] = jnp.zeros((1,), jnp.float32)
    p["wc1"] = jax.random.normal(ks[10], (inplanes, planes), jnp.float32)
    p["bc1"] = jnp.zeros((planes,), jnp.float32)
    p["wc2"] = jax.random.normal(ks[11], (planes, planes), jnp.float32)
    p["bc2"] = jnp.zeros((planes,), jnp.float32)
    return p


if __name__ == "__main__":
    N, inplanes, H, W = 2, 16, 16, 16
    planes, eta = 4, 8                   # inplanes == planes * 4 -> identity shortcut

    key = jax.random.PRNGKey(0)
    k_x, k_p = jax.random.split(key)
    x = jax.random.normal(k_x, (N, inplanes, H, W), jnp.float32)    # NCHW, like PyTorch
    params = make_params(k_p, inplanes, planes)

    norm_1 = jnp.zeros((0, N + 1), jnp.float32)
    norm_2 = jnp.zeros((0, N + 1), jnp.float32)
    flops = jnp.zeros((0, N + 1), jnp.float32)

    out, n1, n2, fl, aux = bottleneck_forward(
        x, params, norm_1, norm_2, flops, eta=eta, return_aux=True)
    jax.block_until_ready((out, n1, n2, fl))

    assert out.shape == (N, planes * 4, H, W)
    assert n1.shape == (1, N + 1) and n2.shape == (2, N + 1) and fl.shape == (1, N + 1)

    # numerical check vs plain-JAX / lax.conv reference (bf16 MXU path => loose tolerance)
    ref_out1, ref_out = reference_outputs(x, params, aux)
    err1 = float(jnp.max(jnp.abs(
        aux["out1"].astype(jnp.float32).reshape(N, H, W, planes) - ref_out1)))
    err = float(jnp.max(jnp.abs(out.astype(jnp.float32) - ref_out)))
    assert err1 < 5e-2 and err < 7.5e-2, (err1, err)

    # exercise the kernel-2 row-tiling path (4 row tiles per image at this size)
    out_t = bottleneck_forward(x, params, norm_1, norm_2, flops, eta=eta,
                               row_tile2=64)[0]
    jax.block_until_ready(out_t)
    err_t = float(jnp.max(jnp.abs(out_t.astype(jnp.float32) - ref_out)))
    assert err_t < 7.5e-2, err_t

    print("KERNEL_OK")
</pallas_src>

<mosaic_0001>
module attributes {stable_mosaic.version = 11 : i64} {
  func.func @_conv1_kernel(%arg0: i32, %arg1: i32, %arg2: memref<1x256x16xbf16, #tpu.memory_space<vmem>>, %arg3: memref<16x4xbf16, #tpu.memory_space<vmem>>, %arg4: memref<1x4xf32, #tpu.memory_space<vmem>>, %arg5: memref<1x1x4xf32, #tpu.memory_space<vmem>>, %arg6: memref<1x256x1xf32, #tpu.memory_space<vmem>>, %arg7: memref<1x256x4xbf16, #tpu.memory_space<vmem>>) attributes {dimension_semantics = [#tpu.dimension_semantics<parallel>, #tpu.dimension_semantics<parallel>], iteration_bounds = array<i64: 2, 1>, scalar_prefetch = 0 : i64, scratch_operands = 0 : i64, tpu.core_type = #tpu.core_type<tc>, window_params = [{transform_indices = @transform_0, window_bounds = array<i64: 1, 256, 16>}, {pipeline_mode = #tpu.pipeline_mode<synchronous>, transform_indices = @transform_1, window_bounds = array<i64: 16, 4>}, {pipeline_mode = #tpu.pipeline_mode<synchronous>, transform_indices = @transform_2, window_bounds = array<i64: 1, 4>}, {transform_indices = @transform_3, window_bounds = array<i64: 1, 1, 4>}, {transform_indices = @transform_4, window_bounds = array<i64: 1, 256, 1>}, {transform_indices = @transform_5, window_bounds = array<i64: 1, 256, 4>}]} {
    %c0 = arith.constant 0 : index
    %c0_0 = arith.constant 0 : index
    %c0_1 = arith.constant 0 : index
    %0 = vector.load %arg2[%c0, %c0_0, %c0_1] : memref<1x256x16xbf16, #tpu.memory_space<vmem>>, vector<1x256x16xbf16>
    %1 = vector.shape_cast %0 : vector<1x256x16xbf16> to vector<256x16xbf16>
    %c0_2 = arith.constant 0 : index
    %c0_3 = arith.constant 0 : index
    %2 = vector.load %arg3[%c0_2, %c0_3] : memref<16x4xbf16, #tpu.memory_space<vmem>>, vector<16x4xbf16>
    %cst = arith.constant dense<0.000000e+00> : vector<256x4xf32>
    %3 = tpu.matmul %1, %2, %cst {dimension_numbers = #tpu.dot_dimension_numbers<[1], [0], [0], [1], [0, 0, 1, 1], [], []>} : vector<256x16xbf16>, vector<16x4xbf16>, vector<256x4xf32> -> vector<256x4xf32>
    %c0_4 = arith.constant 0 : index
    %c0_5 = arith.constant 0 : index
    %4 = vector.load %arg4[%c0_4, %c0_5] : memref<1x4xf32, #tpu.memory_space<vmem>>, vector<1x4xf32>
    %5 = vector.broadcast %4 : vector<1x4xf32> to vector<256x4xf32>
    %6 = arith.addf %3, %5 : vector<256x4xf32>
    %cst_6 = arith.constant 0.000000e+00 : f32
    %7 = vector.broadcast %cst_6 : f32 to vector<256x4xf32>
    %8 = arith.maximumf %6, %7 : vector<256x4xf32>
    %c0_7 = arith.constant 0 : index
    %c0_8 = arith.constant 0 : index
    %c0_9 = arith.constant 0 : index
    %9 = vector.load %arg5[%c0_7, %c0_8, %c0_9] : memref<1x1x4xf32, #tpu.memory_space<vmem>>, vector<1x1x4xf32>
    %10 = vector.shape_cast %9 : vector<1x1x4xf32> to vector<1x4xf32>
    %11 = vector.broadcast %10 : vector<1x4xf32> to vector<256x4xf32>
    %12 = arith.mulf %8, %11 : vector<256x4xf32>
    %c0_10 = arith.constant 0 : index
    %c0_11 = arith.constant 0 : index
    %c0_12 = arith.constant 0 : index
    %13 = vector.load %arg6[%c0_10, %c0_11, %c0_12] : memref<1x256x1xf32, #tpu.memory_space<vmem>>, vector<1x256x1xf32>
    %14 = vector.shape_cast %13 : vector<1x256x1xf32> to vector<256x1xf32>
    %15 = vector.broadcast %14 : vector<256x1xf32> to vector<256x4xf32>
    %16 = arith.mulf %12, %15 : vector<256x4xf32>
    %17 = arith.truncf %16 : vector<256x4xf32> to vector<256x4xbf16>
    %c0_13 = arith.constant 0 : index
    %c0_14 = arith.constant 0 : index
    %c0_15 = arith.constant 0 : index
    %18 = vector.load %arg7[%c0_13, %c0_14, %c0_15] : memref<1x256x4xbf16, #tpu.memory_space<vmem>>, vector<1x256x4xbf16>
    %19 = vector.shape_cast %18 : vector<1x256x4xbf16> to vector<256x4xbf16>
    %20 = vector.shape_cast %17 : vector<256x4xbf16> to vector<1x256x4xbf16>
    tpu.vector_store %arg7[%c0_13, %c0_14, %c0_15], %20 {strides = array<i32>} : memref<1x256x4xbf16, #tpu.memory_space<vmem>>, vector<1x256x4xbf16>,
    return
  }
  func.func @transform_0(%arg0: i32, %arg1: i32) -> (i32, i32, i32) {
    %c0_i32 = arith.constant 0 : i32
    %c0_i32_0 = arith.constant 0 : i32
    return %arg0, %arg1, %c0_i32 : i32, i32, i32
  }
  func.func @transform_1(%arg0: i32, %arg1: i32) -> (i32, i32) {
    %c0_i32 = arith.constant 0 : i32
    %c0_i32_0 = arith.constant 0 : i32
    %c0_i32_1 = arith.constant 0 : i32
    return %c0_i32, %c0_i32_0 : i32, i32
  }
  func.func @transform_2(%arg0: i32, %arg1: i32) -> (i32, i32) {
    %c0_i32 = arith.constant 0 : i32
    %c0_i32_0 = arith.constant 0 : i32
    %c0_i32_1 = arith.constant 0 : i32
    return %c0_i32, %c0_i32_0 : i32, i32
  }
  func.func @transform_3(%arg0: i32, %arg1: i32) -> (i32, i32, i32) {
    %c0_i32 = arith.constant 0 : i32
    %c0_i32_0 = arith.constant 0 : i32
    %c0_i32_1 = arith.constant 0 : i32
    return %arg0, %c0_i32, %c0_i32_0 : i32, i32, i32
  }
  func.func @transform_4(%arg0: i32, %arg1: i32) -> (i32, i32, i32) {
    %c0_i32 = arith.constant 0 : i32
    %c0_i32_0 = arith.constant 0 : i32
    return %arg0, %arg1, %c0_i32 : i32, i32, i32
  }
  func.func @transform_5(%arg0: i32, %arg1: i32) -> (i32, i32, i32) {
    %c0_i32 = arith.constant 0 : i32
    %c0_i32_0 = arith.constant 0 : i32
    return %arg0, %arg1, %c0_i32 : i32, i32, i32
  }
}

</mosaic_0001>

<bundles_post_ra>
// kernel: tpu_custom_call.1
= control target key start
LH: loop header
LB: loop body
LE: loop exit
PB: predicated region body
PF: predicated region fallthrough
CT: control target
= control target key end

     0   :  { %s1489_s18 = smov 0   ;;  %s1491_s19 = smov 0   ;;  %s1805_s0 = inlined_call_operand.vmem [shape: bf16[2,256,16], index: 0, kind: input, shape index: {}]   ;;  %s1806_s1 = inlined_call_operand.vmem [shape: bf16[16,4], index: 1, kind: input, shape index: {}]   ;;  %s1807_s2 = inlined_call_operand.vmem [shape: f32[1,4], index: 2, kind: input, shape index: {}]   ;;  %s1808_s3 = inlined_call_operand.vmem [shape: f32[2,1,4], index: 3, kind: input, shape index: {}]   ;;  %s1809_s4 = inlined_call_operand.vmem [shape: f32[2,256,1], index: 4, kind: input, shape index: {}]   ;;  %s1810_s5 = inlined_call_operand.vmem [shape: bf16[2,256,4], index: 5, kind: output, shape index: {}]  }
   0x1   :  { %s1493_s20 = smov 0  }
   0x2 LB: > { %s27_s21 = sadd.s32 1, %s1452_s19  ;;  %p1226_p0 = scmp.ge.s32.totalorder %s1456_s20, 1  ;;  %s1456_s20 = sphi %s1493_s20, %s15_s20   ;;  %s1452_s19 = sphi %s1491_s19, %s1812_s19   ;;  %s1448_s18 = sphi %s1489_s18, %s1811_s18  }
   0x3   : > { %p29_p1 = scmp.ge.s32.totalorder %s27_s21, 2  ;;  %p233_p2 = scmp.lt.s32.totalorder %s1456_s20, 3 }
   0x5   : > { %s1814_s21 = smov (%p29_p1, %s27_s21), 0  ;;  %p234_p3 = pnand %p1226_p0, %p233_p2 }
   0x6   : > { %v1417_v0 = vld [vmem:[%s1806_s1] sm:$0xff] (!%p234_p3)   ;;  %v1458_v1 = vmov (!%p234_p3), 0   ;;  %p282_p4 = scmp.lt.s32.totalorder (!%p234_p3), %s1448_s18, 1  ;;  %vm442_vm0 = vcmask (!%p234_p3), 130048   ;;  %vm1075_vm1 = vcmask (!%p234_p3), 27648  }
   0x7   : > { %237 = sbr.rel (%p234_p3) target bundleno = 277 (0x115), region = 40  ;;  %1416 = vset.pattern.permute.xlu1 (!%p234_p3), %v1458_v1  ;;  %1415 = vset.pattern.permute.xlu0 (!%p234_p3), %v1458_v1 }
   0x8   : > { %1354 = vmatprep.subr.bf16.mxu0 (!%p234_p3), %v1417_v0  ;;  %1388 = vmatprep.subr.bf16.mxu1 (!%p234_p3), %v1417_v0 }
   0x9   : > { %1355 = vmatpush3.bf16.msra.mxu0 (!%p234_p3), %v1417_v0  ;;  %1389 = vmatpush3.bf16.msra.mxu1 (!%p234_p3), %v1417_v0 }
   0xe   : > { %s1816_s18 = smov (!%p282_p4, %s1448_s18), 1 }
   0xf   : > { %s1303_s24 = sshll.u32 %s1816_s18, 8  ;;  %s1302_s25 = sshll.u32 %s1816_s18, 7 }
  0x10   : > { %s1517_s28 = scalar_lea.vmem %s1809_s4, %s1303_s24  ;;  %s1524_s6 = scalar_lea.vmem %s1805_s0, %s1302_s25 }
  0x11   : > { %v725_v2 = vld [vmem:[%s1517_s28 + $0x10] sm:$0xff]  ;;  %v723_v3 = vld [vmem:[%s1517_s28] sm:$0xff]  ;;  %v1420_v6 = vld [vmem:[%s1524_s6 + $0x8] sm:$0xff]   ;;  %s293_s11 = scalar_lea.vmem %s1808_s3, %s1816_s18  ;;  %s1655_s14 = scalar_lea.vmem %s1810_s5, %s1302_s25 }
  0x12   : > { %767 = vperm.xlu1 %1416, %v725_v2   ;;  %757 = vperm.xlu0 %1415, %v723_v3   ;;  %v1418_v4 = vld [vmem:[%s1524_s6] sm:$0xff]   ;;  %v1421_v7 = vld [vmem:[%s1524_s6 + $0x48] sm:$0xff]   ;;  %v726_v8 = vld [vmem:[%s1517_s28 + $0x18] sm:$0xff] }
  0x13   : > { %v1419_v5 = vld [vmem:[%s1524_s6 + $0x40] sm:$0xff]   ;;  %1356 = vmatprep.mubr.msk.bf16.mxu0 %vm442_vm0, %v1418_v4  ;;  %v724_v9 = vld [vmem:[%s1517_s28 + $0x8] sm:$0xff]  ;;  %v1422_v12 = vld [vmem:[%s1524_s6 + $0x10] sm:$0xff]  }
  0x14   : > { %1372 = vmatprep.mubr.msk.bf16.mxu1 %vm442_vm0, %v1419_v5  ;;  %1357 = vmatmul.mubr.msk.bf16.vlgmr.msra.gmra.mrb[0].mxu0 %vm442_vm0, %v1420_v6  ;;  %v728_v10 = vld [vmem:[%s1517_s28 + $0x28] sm:$0xff]  ;;  %v727_v11 = vld [vmem:[%s1517_s28 + $0x20] sm:$0xff]  ;;  %v1423_v13 = vld [vmem:[%s1524_s6 + $0x50] sm:$0xff]  }
  0x15   : > { %1373 = vmatmul.mubr.msk.bf16.vlgmr.msra.gmra.mrb[0].mxu1 %vm442_vm0, %v1421_v7  ;;  %1360 = vmatprep.mubr.msk.bf16.mxu0 %vm442_vm0, %v1422_v12  ;;  %v1424_v14 = vld [vmem:[%s1524_s6 + $0x18] sm:$0xff]   ;;  %v729_v17 = vld [vmem:[%s1517_s28 + $0x30] sm:$0xff]  ;;  %v1426_v18 = vld [vmem:[%s1524_s6 + $0x20] sm:$0xff]  }
  0x16   : > { %772 = vperm.xlu1 %1416, %v726_v8   ;;  %762 = vperm.xlu0 %1415, %v724_v9   ;;  %v1425_v15 = vld [vmem:[%s1524_s6 + $0x58] sm:$0xff]   ;;  %v1427_v19 = vld [vmem:[%s1524_s6 + $0x60] sm:$0xff]   ;;  %v732_v20 = vld [vmem:[%s1517_s28 + $0x48] sm:$0xff] }
  0x17   : > { %1376 = vmatprep.mubr.msk.bf16.mxu1 %vm442_vm0, %v1423_v13  ;;  %v730_v16 = vld [vmem:[%s1517_s28 + $0x38] sm:$0xff]  ;;  %v731_v21 = vld [vmem:[%s1517_s28 + $0x40] sm:$0xff]  ;;  %v1428_v22 = vld [vmem:[%s1524_s6 + $0x28] sm:$0xff]  }
  0x18   : > { %v1429_v23 = vld [vmem:[%s1524_s6 + $0x68] sm:$0xff]   ;;  %v734_v24 = vld [vmem:[%s1517_s28 + $0x58] sm:$0xff]  ;;  %v733_v25 = vld [vmem:[%s1517_s28 + $0x50] sm:$0xff] }
  0x19   : > { %v1430_v26 = vld [vmem:[%s1524_s6 + $0x30] sm:$0xff]   ;;  %v736_v28 = vld [vmem:[%s1517_s28 + $0x68] sm:$0xff]  ;;  %v735_v29 = vld [vmem:[%s1517_s28 + $0x60] sm:$0xff] }
  0x1a   : > { %782 = vperm.xlu1 %1416, %v728_v10   ;;  %777 = vperm.xlu0 %1415, %v727_v11   ;;  %v1431_v27 = vld [vmem:[%s1524_s6 + $0x70] sm:$0xff]   ;;  %v1432_v30 = vld [vmem:[%s1524_s6 + $0x38] sm:$0xff]   ;;  %v740_v34 = vld [vmem:[%s1517_s28 + $0x88] sm:$0xff] }
  0x1b   : > { %v1433_v31 = vld [vmem:[%s1524_s6 + $0x78] sm:$0xff]   ;;  %v737_v33 = vld [vmem:[%s1517_s28 + $0x70] sm:$0xff]  ;;  %v739_v35 = vld [vmem:[%s1517_s28 + $0x80] sm:$0xff] }
  0x1c   : > { %1361 = vmatmul.mubr.msk.bf16.gmra.mrb[4].mxu0 %vm442_vm0, %v1424_v14  ;;  %v738_v32 = vld [vmem:[%s1517_s28 + $0x78] sm:$0xff]  ;;  %v741_v37 = vld [vmem:[%s1517_s28 + $0x90] sm:$0xff]  ;;  %v744_v38 = vld [vmem:[%s1517_s28 + $0xa8] sm:$0xff] }
  0x1d   : > { %1377 = vmatmul.mubr.msk.bf16.gmra.mrb[4].mxu1 %vm442_vm0, %v1425_v15  ;;  %1364 = vmatprep.mubr.msk.bf16.mxu0 %vm442_vm0, %v1426_v18  ;;  %v742_v36 = vld [vmem:[%s1517_s28 + $0x98] sm:$0xff]  ;;  %v743_v39 = vld [vmem:[%s1517_s28 + $0xa0] sm:$0xff]  ;;  %v745_v41 = vld [vmem:[%s1517_s28 + $0xb0] sm:$0xff] }
  0x1e   : > { %792 = vperm.xlu1 %1416, %v730_v16   ;;  %787 = vperm.xlu0 %1415, %v729_v17   ;;  %v746_v40 = vld [vmem:[%s1517_s28 + $0xb8] sm:$0xff]  ;;  %v748_v42 = vld [vmem:[%s1517_s28 + $0xc8] sm:$0xff]  ;;  %v747_v43 = vld [vmem:[%s1517_s28 + $0xc0] sm:$0xff] }
  0x1f   : > { %1380 = vmatprep.mubr.msk.bf16.mxu1 %vm442_vm0, %v1427_v19  ;;  %v750_v44 = vld [vmem:[%s1517_s28 + $0xd8] sm:$0xff]  ;;  %v749_v45 = vld [vmem:[%s1517_s28 + $0xd0] sm:$0xff]  ;;  %v752_v46 = vld [vmem:[%s1517_s28 + $0xe8] sm:$0xff] }
  0x20   : > { %v751_v47 = vld [vmem:[%s1517_s28 + $0xe0] sm:$0xff]  ;;  %v754_v48 = vld [vmem:[%s1517_s28 + $0xf8] sm:$0xff]  ;;  %v753_v49 = vld [vmem:[%s1517_s28 + $0xf0] sm:$0xff] }
  0x21   : > { %v1623_v6 = vld [vmem:[%s1807_s2] ss:$0 sm:$0xff] }
  0x22   : > { %802 = vperm.xlu1 %1416, %v732_v20   ;;  %797 = vperm.xlu0 %1415, %v731_v21   ;;  %v1634_v13 = vld [vmem:[%s293_s11] ss:$0 sm:$0xff] }
  0x24   : > { %1365 = vmatmul.mubr.msk.bf16.gmra.mrb[8].mxu0 %vm442_vm0, %v1428_v22 }
  0x25   : > { %1381 = vmatmul.mubr.msk.bf16.gmra.mrb[8].mxu1 %vm442_vm0, %v1429_v23  ;;  %1368 = vmatprep.mubr.msk.bf16.mxu0 %vm442_vm0, %v1430_v26 }
  0x26   : > { %812 = vperm.xlu1 %1416, %v734_v24   ;;  %807 = vperm.xlu0 %1415, %v733_v25  }
  0x27   : > { %1384 = vmatprep.mubr.msk.bf16.mxu1 %vm442_vm0, %v1431_v27 }
  0x2a   : > { %822 = vperm.xlu1 %1416, %v736_v28   ;;  %817 = vperm.xlu0 %1415, %v735_v29  }
  0x2c   : > { %1369 = vmatmul.mubr.msk.bf16.gmra.mrb[12].mxu0 %vm442_vm0, %v1432_v30 }
  0x2d   : > { %1385 = vmatmul.mubr.msk.bf16.gmra.mrb[12].mxu1 %vm442_vm0, %v1433_v31 }
  0x2e   : > { %832 = vperm.xlu1 %1416, %v738_v32   ;;  %827 = vperm.xlu0 %1415, %v737_v33  }
  0x32   : > { %842 = vperm.xlu1 %1416, %v740_v34   ;;  %837 = vperm.xlu0 %1415, %v739_v35  }
  0x36   : > { %852 = vperm.xlu1 %1416, %v742_v36   ;;  %847 = vperm.xlu0 %1415, %v741_v37  }
  0x3a   : > { %862 = vperm.xlu1 %1416, %v744_v38   ;;  %857 = vperm.xlu0 %1415, %v743_v39  }
  0x3e   : > { %872 = vperm.xlu1 %1416, %v746_v40   ;;  %867 = vperm.xlu0 %1415, %v745_v41  }
  0x42   : > { %882 = vperm.xlu1 %1416, %v748_v42   ;;  %877 = vperm.xlu0 %1415, %v747_v43  }
  0x46   : > { %892 = vperm.xlu1 %1416, %v750_v44   ;;  %887 = vperm.xlu0 %1415, %v749_v45  }
  0x4a   : > { %902 = vperm.xlu1 %1416, %v752_v46   ;;  %897 = vperm.xlu0 %1415, %v751_v47  }
  0x4e   : > { %912 = vperm.xlu1 %1416, %v754_v48   ;;  %907 = vperm.xlu0 %1415, %v753_v49  }
  0x91   : > { %v768_v50 = vpop.permute.xlu1 %767  ;;  %v758_v51 = vpop.permute.xlu0 %757 }
  0x95   : > { %v1590_v52 = vpop.permute.xlu1 %772  ;;  %v1592_v53 = vpop.permute.xlu0 %762 }
  0x99   : > { %v1594_v54 = vpop.permute.xlu1 %782  ;;  %v1596_v55 = vpop.permute.xlu0 %777 }
  0x9d   : > { %v1598_v56 = vpop.permute.xlu1 %792  ;;  %v1600_v57 = vpop.permute.xlu0 %787 }
  0xa1   : > { %v1602_v58 = vpop.permute.xlu1 %802  ;;  %v1604_v59 = vpop.permute.xlu0 %797 }
  0xa5   : > { %v1606_v60 = vpop.permute.xlu1 %812  ;;  %v1608_v61 = vpop.permute.xlu0 %807 }
  0xa9   : > { %v1610_v62 = vpop.permute.xlu1 %822  ;;  %v1612_v63 = vpop.permute.xlu0 %817 }
  0xad   : > { %v1614_v0 = vpop.permute.xlu1 %832  ;;  %v1616_v1 = vpop.permute.xlu0 %827 }
  0xb1   : > { %v1618_v2 = vpop.permute.xlu1 %842  ;;  %v838_v3 = vpop.permute.xlu0 %837 }
  0xb5   : > { %v853_v4 = vpop.permute.xlu1 %852  ;;  %v848_v5 = vpop.permute.xlu0 %847 }
  0xb9   : > { %v1625_v7 = vpop.permute.xlu1 %862  ;;  %v1631_v8 = vpop.permute.xlu0 %857 }
  0xbd   : > { %v1646_v36 = vpop.permute.xlu1 %872  ;;  %v868_v41 = vpop.permute.xlu0 %867 }
  0xe7   : > { %v1358_v9 = vpop.f32.mrb[0].mxu0 }
  0xe8   : > { %v534_v10 = vadd.f32 %v1358_v9, %v1623_v6  ;;  %v1374_v11 = vpop.f32.mrb[0].mxu1  ;;  %v525_v12 = vpop.f32.mrb[1].mxu0 }
  0xe9   : > { %v598_v14 = vadd.f32 %v1374_v11, %v1623_v6  ;;  %v526_v15 = vadd.f32 %v1623_v6, %v525_v12  ;;  %v589_v16 = vpop.f32.mrb[1].mxu1  ;;  %v1359_v17 = vpop.f32.mrb[2].mxu0 }
  0xea   : > { %v654_v18 = vmax.f32 %v534_v10, 0.0  ;;  %v590_v19 = vadd.f32 %v1623_v6, %v589_v16  ;;  %v537_v20 = vadd.f32 %v1359_v17, %v1623_v6  ;;  %v1375_v21 = vpop.f32.mrb[2].mxu1  ;;  %v528_v22 = vpop.f32.mrb[3].mxu0 }
  0xeb   : > { %v670_v23 = vmax.f32 %v598_v14, 0.0  ;;  %v652_v24 = vmax.f32 %v526_v15, 0.0  ;;  %v601_v25 = vadd.f32 %v1375_v21, %v1623_v6  ;;  %v529_v26 = vadd.f32 %v1623_v6, %v528_v22  ;;  %v592_v27 = vpop.f32.mrb[3].mxu1 }
  0xec   : > { %v693_v28 = vmul.f32 %v1634_v13, %v654_v18  ;;  %v668_v29 = vmax.f32 %v590_v19, 0.0  ;;  %v655_v30 = vmax.f32 %v537_v20, 0.0  ;;  %v593_v31 = vadd.f32 %v1623_v6, %v592_v27 }
  0xed   : > { %v709_v32 = vmul.f32 %v1634_v13, %v670_v23  ;;  %v691_v33 = vmul.f32 %v1634_v13, %v652_v24  ;;  %v671_v34 = vmax.f32 %v601_v25, 0.0  ;;  %v653_v35 = vmax.f32 %v529_v26, 0.0 }
  0xee   : > { %v917_v37 = vmul.f32 %v768_v50, %v693_v28  ;;  %v707_v38 = vmul.f32 %v1634_v13, %v668_v29  ;;  %v694_v39 = vmul.f32 %v1634_v13, %v655_v30  ;;  %v669_v40 = vmax.f32 %v593_v31, 0.0  ;;  %v1684_v30 = vpop.permute.xlu1 %882 }
  0xef   : > { %v933_v42 = vmul.f32 %v848_v5, %v709_v32  ;;  %v915_v43 = vmul.f32 %v758_v51, %v691_v33  ;;  %v710_v44 = vmul.f32 %v1634_v13, %v671_v34  ;;  %v692_v45 = vmul.f32 %v1634_v13, %v653_v35  ;;  %v1362_v46 = vpop.f32.mrb[4].mxu0  ;;  %v1690_v35 = vpop.permute.xlu0 %877 }
  0xf0   : > { %v1307_v47 = vpack.c.bf16 %v917_v37, %v917_v37  ;;  %v931_v48 = vmul.f32 %v838_v3, %v707_v38  ;;  %v918_v49 = vmul.f32 %v1590_v52, %v694_v39  ;;  %v708_v50 = vmul.f32 %v1634_v13, %v669_v40  ;;  %v1378_v9 = vpop.f32.mrb[4].mxu1  ;;  %v541_v10 = vpop.f32.mrb[5].mxu0 }
  0xf1   : > { %v1323_v11 = vpack.c.bf16 %v933_v42, %v933_v42  ;;  %v1305_v12 = vpack.c.bf16 %v915_v43, %v915_v43  ;;  %v934_v5 = vmul.f32 %v853_v4, %v710_v44  ;;  %v916_v51 = vmul.f32 %v1592_v53, %v692_v45  ;;  %v605_v14 = vpop.f32.mrb[5].mxu1  ;;  %v1363_v15 = vpop.f32.mrb[6].mxu0 }
  0xf2   : > { %1078 = vst.msk [vmem:[%s1655_s14 + $0x8] sm:$0xf] %vm1075_vm1, %v1307_v47  ;;  %v1321_v3 = vpack.c.bf16 %v931_v48, %v931_v48  ;;  %v1308_v16 = vpack.c.bf16 %v918_v49, %v918_v49  ;;  %v932_v52 = vmul.f32 %v1618_v2, %v708_v50  ;;  %v550_v17 = vadd.f32 %v1362_v46, %v1623_v6  ;;  %v1379_v18 = vpop.f32.mrb[6].mxu1  ;;  %v544_v19 = vpop.f32.mrb[7].mxu0 }
  0xf3   : > { %1094 = vst.msk [vmem:[%s1655_s14 + $0x48] sm:$0xf] %vm1075_vm1, %v1323_v11  ;;  %1076 = vst.msk [vmem:[%s1655_s14] sm:$0xf] %vm1075_vm1, %v1305_v12  ;;  %v1324_v53 = vpack.c.bf16 %v934_v5, %v934_v5  ;;  %v1306_v4 = vpack.c.bf16 %v916_v51, %v916_v51  ;;  %v614_v20 = vadd.f32 %v1378_v9, %v1623_v6  ;;  %v608_v22 = vpop.f32.mrb[7].mxu1 }
  0xf4   : > { %v542_v21 = vadd.f32 %v1623_v6, %v541_v10  ;;  %1092 = vst.msk [vmem:[%s1655_s14 + $0x40] sm:$0xf] %vm1075_vm1, %v1321_v3  ;;  %1079 = vst.msk [vmem:[%s1655_s14 + $0xc] sm:$0xf] %vm1075_vm1, %v1308_v16  ;;  %v1322_v2 = vpack.c.bf16 %v932_v52, %v932_v52  ;;  %v658_v23 = vmax.f32 %v550_v17, 0.0  ;;  %v606_v24 = vadd.f32 %v1623_v6, %v605_v14 }
  0xf5   : > { %v553_v25 = vadd.f32 %v1363_v15, %v1623_v6  ;;  %1095 = vst.msk [vmem:[%s1655_s14 + $0x4c] sm:$0xf] %vm1075_vm1, %v1324_v53  ;;  %1077 = vst.msk [vmem:[%s1655_s14 + $0x4] sm:$0xf] %vm1075_vm1, %v1306_v4  ;;  %v674_v26 = vmax.f32 %v614_v20, 0.0  ;;  %v617_v28 = vadd.f32 %v1379_v18, %v1623_v6  ;;  %v545_v29 = vadd.f32 %v1623_v6, %v544_v19  ;;  %v893_v20 = vpop.permute.xlu1 %892 }
  0xf6   : > { %v656_v27 = vmax.f32 %v542_v21, 0.0  ;;  %1093 = vst.msk [vmem:[%s1655_s14 + $0x44] sm:$0xf] %vm1075_vm1, %v1322_v2  ;;  %v697_v31 = vmul.f32 %v1634_v13, %v658_v23  ;;  %v672_v32 = vmax.f32 %v606_v24, 0.0  ;;  %v609_v34 = vadd.f32 %v1623_v6, %v608_v22  ;;  %v888_v23 = vpop.permute.xlu0 %887 }
  0xf7   : > { %v659_v33 = vmax.f32 %v553_v25, 0.0  ;;  %v713_v37 = vmul.f32 %v1634_v13, %v674_v26  ;;  %v675_v39 = vmax.f32 %v617_v28, 0.0  ;;  %v657_v40 = vmax.f32 %v545_v29, 0.0  ;;  %v1366_v42 = vpop.f32.mrb[8].mxu0 }
  0xf8   : > { %v695_v38 = vmul.f32 %v1634_v13, %v656_v27  ;;  %v921_v43 = vmul.f32 %v1600_v57, %v697_v31  ;;  %v711_v44 = vmul.f32 %v1634_v13, %v672_v32  ;;  %v673_v46 = vmax.f32 %v609_v34, 0.0  ;;  %v1382_v47 = vpop.f32.mrb[8].mxu1  ;;  %v557_v48 = vpop.f32.mrb[9].mxu0 }
  0xf9   : > { %v698_v45 = vmul.f32 %v1634_v13, %v659_v33  ;;  %v937_v49 = vmul.f32 %v868_v41, %v713_v37  ;;  %v714_v9 = vmul.f32 %v1634_v13, %v675_v39  ;;  %v696_v10 = vmul.f32 %v1634_v13, %v657_v40  ;;  %v621_v11 = vpop.f32.mrb[9].mxu1  ;;  %v1367_v12 = vpop.f32.mrb[10].mxu0 }
  0xfa   : > { %v919_v50 = vmul.f32 %v1596_v55, %v695_v38  ;;  %v1311_v5 = vpack.c.bf16 %v921_v43, %v921_v43  ;;  %v935_v57 = vmul.f32 %v1631_v8, %v711_v44  ;;  %v712_v14 = vmul.f32 %v1634_v13, %v673_v46  ;;  %v1383_v15 = vpop.f32.mrb[10].mxu1  ;;  %v560_v41 = vpop.f32.mrb[11].mxu0 }
  0xfb   : > { %v922_v51 = vmul.f32 %v1598_v56, %v698_v45  ;;  %v1327_v3 = vpack.c.bf16 %v937_v49, %v937_v49  ;;  %v938_v16 = vmul.f32 %v1646_v36, %v714_v9  ;;  %v920_v52 = vmul.f32 %v1594_v54, %v696_v10  ;;  %v624_v17 = vpop.f32.mrb[11].mxu1 }
  0xfc   : > { %v1309_v55 = vpack.c.bf16 %v919_v50, %v919_v50  ;;  %1082 = vst.msk [vmem:[%s1655_s14 + $0x18] sm:$0xf] %vm1075_vm1, %v1311_v5  ;;  %v1325_v18 = vpack.c.bf16 %v935_v57, %v935_v57  ;;  %v936_v19 = vmul.f32 %v1625_v7, %v712_v14  ;;  %v566_v56 = vadd.f32 %v1366_v42, %v1623_v6 }
  0xfd   : > { %v1312_v8 = vpack.c.bf16 %v922_v51, %v922_v51  ;;  %1098 = vst.msk [vmem:[%s1655_s14 + $0x58] sm:$0xf] %vm1075_vm1, %v1327_v3  ;;  %v1328_v53 = vpack.c.bf16 %v938_v16, %v938_v16  ;;  %v1310_v36 = vpack.c.bf16 %v920_v52, %v920_v52  ;;  %v630_v4 = vadd.f32 %v1382_v47, %v1623_v6 }
  0xfe   : > { %1080 = vst.msk [vmem:[%s1655_s14 + $0x10] sm:$0xf] %vm1075_vm1, %v1309_v55  ;;  %v558_v54 = vadd.f32 %v1623_v6, %v557_v48  ;;  %1096 = vst.msk [vmem:[%s1655_s14 + $0x50] sm:$0xf] %vm1075_vm1, %v1325_v18  ;;  %v1326_v7 = vpack.c.bf16 %v936_v19, %v936_v19  ;;  %v662_v21 = vmax.f32 %v566_v56, 0.0  ;;  %v622_v22 = vadd.f32 %v1623_v6, %v621_v11  ;;  %v898_v55 = vpop.permute.xlu0 %897  ;;  %v903_v19 = vpop.permute.xlu1 %902 }
  0xff   : > { %1083 = vst.msk [vmem:[%s1655_s14 + $0x1c] sm:$0xf] %vm1075_vm1, %v1312_v8  ;;  %v569_v2 = vadd.f32 %v1367_v12, %v1623_v6  ;;  %1099 = vst.msk [vmem:[%s1655_s14 + $0x5c] sm:$0xf] %vm1075_vm1, %v1328_v53  ;;  %v678_v24 = vmax.f32 %v630_v4, 0.0  ;;  %v633_v26 = vadd.f32 %v1383_v15, %v1623_v6  ;;  %v561_v27 = vadd.f32 %v1623_v6, %v560_v41  ;;  %v1370_v28 = vpop.f32.mrb[12].mxu0 }
 0x100   : > { %1081 = vst.msk [vmem:[%s1655_s14 + $0x14] sm:$0xf] %vm1075_vm1, %v1310_v36  ;;  %v660_v25 = vmax.f32 %v558_v54, 0.0  ;;  %1097 = vst.msk [vmem:[%s1655_s14 + $0x54] sm:$0xf] %vm1075_vm1, %v1326_v7  ;;  %v701_v29 = vmul.f32 %v1634_v13, %v662_v21  ;;  %v676_v31 = vmax.f32 %v622_v22, 0.0  ;;  %v625_v33 = vadd.f32 %v1623_v6, %v624_v17 }
 0x101   : > { %v663_v32 = vmax.f32 %v569_v2, 0.0  ;;  %v1386_v34 = vpop.f32.mrb[12].mxu1  ;;  %v573_v37 = vpop.f32.mrb[13].mxu0  ;;  %v717_v38 = vmul.f32 %v1634_v13, %v678_v24  ;;  %v679_v40 = vmax.f32 %v633_v26, 0.0  ;;  %v661_v42 = vmax.f32 %v561_v27, 0.0 }
 0x102   : > { %v699_v39 = vmul.f32 %v1634_v13, %v660_v25  ;;  %v637_v43 = vpop.f32.mrb[13].mxu1  ;;  %v1371_v44 = vpop.f32.mrb[14].mxu0  ;;  %v925_v45 = vmul.f32 %v1608_v61, %v701_v29  ;;  %v715_v46 = vmul.f32 %v1634_v13, %v676_v31  ;;  %v677_v48 = vmax.f32 %v625_v33, 0.0 }
 0x103   : > { %v702_v47 = vmul.f32 %v1634_v13, %v663_v32  ;;  %v1387_v49 = vpop.f32.mrb[14].mxu1  ;;  %v576_v50 = vpop.f32.mrb[15].mxu0  ;;  %v941_v9 = vmul.f32 %v888_v23, %v717_v38  ;;  %v718_v11 = vmul.f32 %v1634_v13, %v679_v40  ;;  %v700_v12 = vmul.f32 %v1634_v13, %v661_v42 }
 0x104   : > { %v923_v10 = vmul.f32 %v1604_v59, %v699_v39  ;;  %v640_v5 = vpop.f32.mrb[15].mxu1  ;;  %v1315_v57 = vpack.c.bf16 %v925_v45, %v925_v45  ;;  %v939_v61 = vmul.f32 %v1690_v35, %v715_v46  ;;  %v716_v14 = vmul.f32 %v1634_v13, %v677_v48  ;;  %v913_v39 = vpop.permute.xlu1 %912 }
 0x105   : > { %v926_v51 = vmul.f32 %v1606_v60, %v702_v47  ;;  %v1331_v15 = vpack.c.bf16 %v941_v9, %v941_v9  ;;  %v942_v3 = vmul.f32 %v893_v20, %v718_v11  ;;  %v924_v59 = vmul.f32 %v1602_v58, %v700_v12 }
 0x106   : > { %v1313_v41 = vpack.c.bf16 %v923_v10, %v923_v10  ;;  %1086 = vst.msk [vmem:[%s1655_s14 + $0x28] sm:$0xf] %vm1075_vm1, %v1315_v57  ;;  %v1329_v16 = vpack.c.bf16 %v939_v61, %v939_v61  ;;  %v940_v17 = vmul.f32 %v1684_v30, %v716_v14  ;;  %v582_v60 = vadd.f32 %v1370_v28, %v1623_v6  ;;  %v908_v28 = vpop.permute.xlu0 %907 }
 0x107   : > { %v1316_v52 = vpack.c.bf16 %v926_v51, %v926_v51  ;;  %1102 = vst.msk [vmem:[%s1655_s14 + $0x68] sm:$0xf] %vm1075_vm1, %v1331_v15  ;;  %v1332_v35 = vpack.c.bf16 %v942_v3, %v942_v3  ;;  %v1314_v18 = vpack.c.bf16 %v924_v59, %v924_v59  ;;  %v646_v58 = vadd.f32 %v1386_v34, %v1623_v6 }
 0x108   : > { %1084 = vst.msk [vmem:[%s1655_s14 + $0x20] sm:$0xf] %vm1075_vm1, %v1313_v41  ;;  %v574_v8 = vadd.f32 %v1623_v6, %v573_v37  ;;  %1100 = vst.msk [vmem:[%s1655_s14 + $0x60] sm:$0xf] %vm1075_vm1, %v1329_v16  ;;  %v1330_v30 = vpack.c.bf16 %v940_v17, %v940_v17  ;;  %v666_v56 = vmax.f32 %v582_v60, 0.0  ;;  %v638_v53 = vadd.f32 %v1623_v6, %v637_v43 }
 0x109   : > { %1087 = vst.msk [vmem:[%s1655_s14 + $0x2c] sm:$0xf] %vm1075_vm1, %v1316_v52  ;;  %v585_v36 = vadd.f32 %v1371_v44, %v1623_v6  ;;  %1103 = vst.msk [vmem:[%s1655_s14 + $0x6c] sm:$0xf] %vm1075_vm1, %v1332_v35  ;;  %v682_v4 = vmax.f32 %v646_v58, 0.0  ;;  %v649_v20 = vadd.f32 %v1387_v49, %v1623_v6  ;;  %v577_v7 = vadd.f32 %v1623_v6, %v576_v50 }
 0x10a   : > { %1085 = vst.msk [vmem:[%s1655_s14 + $0x24] sm:$0xf] %vm1075_vm1, %v1314_v18  ;;  %v664_v54 = vmax.f32 %v574_v8, 0.0  ;;  %1101 = vst.msk [vmem:[%s1655_s14 + $0x64] sm:$0xf] %vm1075_vm1, %v1330_v30  ;;  %v705_v21 = vmul.f32 %v1634_v13, %v666_v56  ;;  %v680_v22 = vmax.f32 %v638_v53, 0.0  ;;  %v641_v23 = vadd.f32 %v1623_v6, %v640_v5 }
 0x10b   : > { %v667_v2 = vmax.f32 %v585_v36, 0.0  ;;  %v721_v24 = vmul.f32 %v1634_v13, %v682_v4  ;;  %v683_v26 = vmax.f32 %v649_v20, 0.0  ;;  %v665_v27 = vmax.f32 %v577_v7, 0.0 }
 0x10c   : > { %v703_v25 = vmul.f32 %v1634_v13, %v664_v54  ;;  %v929_v29 = vmul.f32 %v1616_v1, %v705_v21  ;;  %v719_v31 = vmul.f32 %v1634_v13, %v680_v22  ;;  %v681_v33 = vmax.f32 %v641_v23, 0.0 }
 0x10d   : > { %v706_v32 = vmul.f32 %v1634_v13, %v667_v2  ;;  %v945_v34 = vmul.f32 %v908_v28, %v721_v24  ;;  %v722_v6 = vmul.f32 %v1634_v13, %v683_v26  ;;  %v704_v38 = vmul.f32 %v1634_v13, %v665_v27 }
 0x10e   : > { %v927_v37 = vmul.f32 %v1612_v63, %v703_v25  ;;  %v1319_v40 = vpack.c.bf16 %v929_v29, %v929_v29  ;;  %v943_v42 = vmul.f32 %v898_v55, %v719_v31  ;;  %v720_v43 = vmul.f32 %v1634_v13, %v681_v33 }
 0x10f   : > { %v930_v1 = vmul.f32 %v1614_v0, %v706_v32  ;;  %v1335_v44 = vpack.c.bf16 %v945_v34, %v945_v34  ;;  %v946_v63 = vmul.f32 %v913_v39, %v722_v6  ;;  %v928_v46 = vmul.f32 %v1610_v62, %v704_v38 }
 0x110   : > { %v1317_v45 = vpack.c.bf16 %v927_v37, %v927_v37  ;;  %1090 = vst.msk [vmem:[%s1655_s14 + $0x38] sm:$0xf] %vm1075_vm1, %v1319_v40  ;;  %v1333_v47 = vpack.c.bf16 %v943_v42, %v943_v42  ;;  %v944_v49 = vmul.f32 %v903_v19, %v720_v43 }
 0x111   : > { %v1320_v48 = vpack.c.bf16 %v930_v1, %v930_v1  ;;  %1106 = vst.msk [vmem:[%s1655_s14 + $0x78] sm:$0xf] %vm1075_vm1, %v1335_v44  ;;  %v1336_v0 = vpack.c.bf16 %v946_v63, %v946_v63  ;;  %v1318_v50 = vpack.c.bf16 %v928_v46, %v928_v46 }
 0x112   : > { %1088 = vst.msk [vmem:[%s1655_s14 + $0x30] sm:$0xf] %vm1075_vm1, %v1317_v45  ;;  %1104 = vst.msk [vmem:[%s1655_s14 + $0x70] sm:$0xf] %vm1075_vm1, %v1333_v47  ;;  %v1334_v13 = vpack.c.bf16 %v944_v49, %v944_v49 }
 0x113   : > { %1091 = vst.msk [vmem:[%s1655_s14 + $0x3c] sm:$0xf] %vm1075_vm1, %v1320_v48  ;;  %1107 = vst.msk [vmem:[%s1655_s14 + $0x7c] sm:$0xf] %vm1075_vm1, %v1336_v0 }
 0x114   : > { %1089 = vst.msk [vmem:[%s1655_s14 + $0x34] sm:$0xf] %vm1075_vm1, %v1318_v50  ;;  %1105 = vst.msk [vmem:[%s1655_s14 + $0x74] sm:$0xf] %vm1075_vm1, %v1334_v13 }
 0x115 PF: > { %s15_s20 = sadd.s32 1, %s1456_s20   ;;  %s1811_s18 = smov %s1452_s19 }
 0x116   : > { %p12_p5 = scmp.ge.s32.totalorder %s15_s20, 4   ;;  %s1812_s19 = smov %s1814_s21 }
 0x118   :  { %14 = sbr.rel (!%p12_p5) target bundleno = 2 (0x2), region = 76 }

</bundles_post_ra>
